<compile_context>
chip_gen: v7x
topology: tpu7x:2x2x1
jax: 0.10.0
libtpu: 0.0.40
codegen_flags: <defaults>
</compile_context>

<pallas_src>
import functools

import jax
import jax.numpy as jnp
from jax.experimental import pallas as pl
from jax.experimental.pallas import tpu as pltpu

_NODE_TILE = 256                      # dst-node tile (M) and src-contraction tile (K)
_LANE = 128                           # lane-dense padding for feature/hidden/out dims
_VMEM_LIMIT = 48 * 1024 * 1024        # explicit scoped-VMEM budget (safe on v5e/v6e/v7x)
_NEG_SLOPE = 0.01                     # F.leaky_relu default


def _round_up(n, m):
    return ((n + m - 1) // m) * m


def _pad_to(x, shape):
    return jnp.pad(x, [(0, t - s) for s, t in zip(x.shape, shape)])


# -----------------------------------------------------------------------------
# Kernel 1: per-ntype nn.Linear   hid = X @ W + b
#   grid = (N_p / tm,) over dst-node tiles, 'parallel' (megacore on v7x).
#   Weights are small for this model, so the full (F_p, H_p) weight sits in one
#   block; bias add happens here, outside any contraction loop.
# -----------------------------------------------------------------------------
def _linear_kernel(x_ref, w_ref, b_ref, o_ref):
    x = x_ref[...].astype(jnp.bfloat16)                       # bf16 into MXU
    o_ref[...] = (jnp.dot(x, w_ref[...], preferred_element_type=jnp.float32)
                  + b_ref[...]).astype(o_ref.dtype)           # f32 bias add


def _linear(x, w_bf16, b_f32, *, tm):
    m_p, f_p = x.shape
    h_p = w_bf16.shape[1]
    assert m_p % tm == 0
    flops = 2 * m_p * f_p * h_p
    bytes_accessed = int(x.size * 4 + w_bf16.size * 2 + b_f32.size * 4 + m_p * h_p * 4)
    return pl.pallas_call(
        _linear_kernel,
        out_shape=jax.ShapeDtypeStruct((m_p, h_p), jnp.float32),
        grid=(m_p // tm,),
        in_specs=[pl.BlockSpec((tm, f_p), lambda m: (m, 0)),
                  pl.BlockSpec((f_p, h_p), lambda m: (0, 0)),
                  pl.BlockSpec((1, h_p), lambda m: (0, 0))],
        out_specs=pl.BlockSpec((tm, h_p), lambda m: (m, 0)),
        compiler_params=pltpu.CompilerParams(
            dimension_semantics=("parallel",),
            vmem_limit_bytes=_VMEM_LIMIT),
        cost_estimate=pl.CostEstimate(flops=flops, transcendentals=0,
                                      bytes_accessed=bytes_accessed),
    )(x, w_bf16, b_f32)


# -----------------------------------------------------------------------------
# Kernel 2: degree-normalized aggregation (adjacency pre-scaled by 1/deg) +
#           residual + optional fused leaky_relu.
#   grid = (N_dst_p/tm ['parallel'], N_src_p/tk ['arbitrary']),
#   f32 VMEM accumulator, init at k==0, residual/activation/store at last k.
# -----------------------------------------------------------------------------
def _agg_kernel(adj_ref, hsrc_ref, hdst_ref, o_ref, acc_ref, *, negative_slope):
    k = pl.program_id(1)

    @pl.when(k == 0)
    def _():
        acc_ref[...] = jnp.zeros_like(acc_ref)

    # (1/deg)-scaled adjacency tile (bf16) x src hidden tile (bf16), f32 accum.
    acc_ref[...] += jnp.dot(adj_ref[...], hsrc_ref[...].astype(jnp.bfloat16),
                            preferred_element_type=jnp.float32)

    @pl.when(k == pl.num_programs(1) - 1)
    def _():
        h = acc_ref[...] + hdst_ref[...]                      # residual (f32 VPU)
        if negative_slope is not None:                        # fused F.leaky_relu
            h = jnp.where(h >= 0, h, negative_slope * h)
        o_ref[...] = h.astype(o_ref.dtype)


def _aggregate(adj_scaled, hid_src, hid_dst, *, negative_slope, tm, tk):
    m_p, k_p = adj_scaled.shape
    h_p = hid_src.shape[1]
    assert m_p % tm == 0 and k_p % tk == 0
    flops = 2 * m_p * k_p * h_p
    bytes_accessed = int(adj_scaled.size * 2 + hid_src.size * 4
                         + hid_dst.size * 4 + m_p * h_p * 4)
    kernel = functools.partial(_agg_kernel, negative_slope=negative_slope)
    return pl.pallas_call(
        kernel,
        out_shape=jax.ShapeDtypeStruct((m_p, h_p), jnp.float32),
        grid=(m_p // tm, k_p // tk),
        in_specs=[pl.BlockSpec((tm, tk), lambda m, k: (m, k)),     # adjacency tile
                  pl.BlockSpec((tk, h_p), lambda m, k: (k, 0)),    # src hidden tile
                  pl.BlockSpec((tm, h_p), lambda m, k: (m, 0))],   # dst residual tile
        out_specs=pl.BlockSpec((tm, h_p), lambda m, k: (m, 0)),
        scratch_shapes=[pltpu.VMEM((tm, h_p), jnp.float32)],
        compiler_params=pltpu.CompilerParams(
            dimension_semantics=("parallel", "arbitrary"),
            vmem_limit_bytes=_VMEM_LIMIT),
        cost_estimate=pl.CostEstimate(flops=flops, transcendentals=0,
                                      bytes_accessed=bytes_accessed),
    )(adj_scaled, hid_src, hid_dst)


# -----------------------------------------------------------------------------
# One-time graph preprocessing (graph is static): padded, degree-scaled bf16
# adjacencies for BOTH aggregation directions.  Hoisted out of the forward so
# the per-call path never re-reads / re-casts / re-transposes the adjacency.
# -----------------------------------------------------------------------------
def prepare_graph(adj_ui, *, node_pad=_NODE_TILE):
    ni, nu = adj_ui.shape
    adj = adj_ui.astype(jnp.float32)
    ni_p, nu_p = _round_up(ni, node_pad), _round_up(nu, node_pad)
    deg_i = jnp.sum(adj, axis=1, keepdims=True)               # item in-degree (user->item)
    deg_u = jnp.sum(adj, axis=0, keepdims=True).T             # user in-degree (item->user)
    inv_di = jnp.where(deg_i > 0, 1.0 / jnp.maximum(deg_i, 1.0), 0.0)
    inv_du = jnp.where(deg_u > 0, 1.0 / jnp.maximum(deg_u, 1.0), 0.0)
    adj_item_dst = _pad_to((inv_di * adj).astype(jnp.bfloat16), (ni_p, nu_p))
    adj_user_dst = _pad_to((inv_du * adj.T).astype(jnp.bfloat16), (nu_p, ni_p))
    return {"adj_item_dst": adj_item_dst, "adj_user_dst": adj_user_dst,
            "nu": nu, "ni": ni, "nu_p": nu_p, "ni_p": ni_p}


# -----------------------------------------------------------------------------
# HeteroGCN.forward: layer1 -> leaky_relu (fused) -> layer2 -> h_dict['user'].
# -----------------------------------------------------------------------------
def hetero_gcn_forward(fea_user, fea_item, graph, params, joint=False):
    (w1u, b1u, w1i, b1i), (w2u, b2u, w2i, b2i) = params
    nu, ni = graph["nu"], graph["ni"]
    nu_p, ni_p = graph["nu_p"], graph["ni_p"]

    fu_p = _round_up(fea_user.shape[1], _LANE)
    fi_p = _round_up(fea_item.shape[1], _LANE)
    hid_p = _round_up(w1u.shape[1], _LANE)
    out = w2u.shape[1]
    out_p = _round_up(out, _LANE)
    tm = tk = _NODE_TILE

    # Lane-dense padding of node features (f32 -> bf16 cast happens in-kernel)
    # and weights (pre-cast bf16 once per call; biases stay f32).
    xu = _pad_to(fea_user.astype(jnp.float32), (nu_p, fu_p))
    xi = _pad_to(fea_item.astype(jnp.float32), (ni_p, fi_p))
    w1u_p = _pad_to(w1u, (fu_p, hid_p)).astype(jnp.bfloat16)
    w1i_p = _pad_to(w1i, (fi_p, hid_p)).astype(jnp.bfloat16)
    w2u_p = _pad_to(w2u, (hid_p, out_p)).astype(jnp.bfloat16)
    w2i_p = _pad_to(w2i, (hid_p, out_p)).astype(jnp.bfloat16)
    b1u_p = _pad_to(b1u, (1, hid_p)).astype(jnp.float32)
    b1i_p = _pad_to(b1i, (1, hid_p)).astype(jnp.float32)
    b2u_p = _pad_to(b2u, (1, out_p)).astype(jnp.float32)
    b2i_p = _pad_to(b2i, (1, out_p)).astype(jnp.float32)

    # ---- layer 1 (leaky_relu fused into the aggregation finalize) ----
    hid1_u = _linear(xu, w1u_p, b1u_p, tm=tm)
    hid1_i = _linear(xi, w1i_p, b1i_p, tm=tm)
    h1_i = _aggregate(graph["adj_item_dst"], hid1_u, hid1_i,
                      negative_slope=_NEG_SLOPE, tm=tm, tk=tk)
    h1_u = _aggregate(graph["adj_user_dst"], hid1_i, hid1_u,
                      negative_slope=_NEG_SLOPE, tm=tm, tk=tk)

    # ---- layer 2 ----
    hid2_u = _linear(h1_u, w2u_p, b2u_p, tm=tm)
    hid2_i = _linear(h1_i, w2i_p, b2i_p, tm=tm)
    h2_i = _aggregate(graph["adj_item_dst"], hid2_u, hid2_i,
                      negative_slope=None, tm=tm, tk=tk)
    h2_u = _aggregate(graph["adj_user_dst"], hid2_i, hid2_u,
                      negative_slope=None, tm=tm, tk=tk)

    h_user = h2_u[:nu, :out]
    h_item = h2_i[:ni, :out]
    if joint:
        # original module indexes 'userA'/'userB'; synthetic schema has 2 ntypes
        return h_user, h_item
    return h_user  # h_dict['user']


# -----------------------------------------------------------------------------
# Pure-JAX reference mirroring the kernels' bf16 operand casts exactly
# (shares the precomputed degree-scaled bf16 adjacencies).
# -----------------------------------------------------------------------------
def hetero_gcn_reference(fea_user, fea_item, graph, params):
    bf = lambda x: x.astype(jnp.bfloat16)
    f32 = jnp.float32
    nu, ni = graph["nu"], graph["ni"]
    a_i = graph["adj_item_dst"][:ni, :nu]            # bf16, row-scaled by 1/deg_i
    a_u = graph["adj_user_dst"][:nu, :ni]            # bf16, row-scaled by 1/deg_u
    (w1u, b1u, w1i, b1i), (w2u, b2u, w2i, b2i) = params

    def layer(xu, xi, wu, bu, wi, bi):
        hid_u = jnp.dot(bf(xu), bf(wu), preferred_element_type=f32) + bu
        hid_i = jnp.dot(bf(xi), bf(wi), preferred_element_type=f32) + bi
        h_i = jnp.dot(a_i, bf(hid_u), preferred_element_type=f32) + hid_i
        h_u = jnp.dot(a_u, bf(hid_i), preferred_element_type=f32) + hid_u
        return h_u, h_i

    lrelu = lambda x: jnp.where(x >= 0, x, _NEG_SLOPE * x)
    hu, hi = layer(fea_user, fea_item, w1u, b1u, w1i, b1i)
    hu, hi = layer(lrelu(hu), lrelu(hi), w2u, b2u, w2i, b2i)
    return hu, hi


def _linear_params(key, in_size, out_size):
    # Matches nn.Linear's uniform(-1/sqrt(in), 1/sqrt(in)) init, deterministically.
    kw, kb = jax.random.split(key)
    bound = 1.0 / jnp.sqrt(jnp.float32(in_size))
    w = jax.random.uniform(kw, (in_size, out_size), jnp.float32, -bound, bound)
    b = jax.random.uniform(kb, (1, out_size), jnp.float32, -bound, bound)
    return w, b


if __name__ == "__main__":
    # Small, deterministic problem (synthetic bipartite user/item graph).
    N_USER, N_ITEM = 16, 24          # node counts per type
    F_USER, F_ITEM = 16, 24          # in_size_dict = {'user': 16, 'item': 24}
    HIDDEN, OUT = 32, 16             # hidden_size, out_size

    root = jax.random.PRNGKey(0)
    k_fu, k_fi, k_adj, k_l1u, k_l1i, k_l2u, k_l2i = jax.random.split(root, 7)

    fea_user = jax.random.normal(k_fu, (N_USER, F_USER), jnp.float32)
    fea_item = jax.random.normal(k_fi, (N_ITEM, F_ITEM), jnp.float32)

    # Random bipartite incidence user->item; rows = dst items, cols = src users.
    adj_ui = jax.random.bernoulli(k_adj, 0.3, (N_ITEM, N_USER)).astype(jnp.float32)

    layer1 = _linear_params(k_l1u, F_USER, HIDDEN) + _linear_params(k_l1i, F_ITEM, HIDDEN)
    layer2 = _linear_params(k_l2u, HIDDEN, OUT) + _linear_params(k_l2i, HIDDEN, OUT)
    params = (layer1, layer2)

    graph = prepare_graph(adj_ui)    # one-time graph preprocessing (hoisted)

    out = hetero_gcn_forward(fea_user, fea_item, graph, params)
    out = jax.block_until_ready(out)

    ref_u, _ = hetero_gcn_reference(fea_user, fea_item, graph, params)
    assert out.shape == (N_USER, OUT) and out.dtype == jnp.float32
    assert jnp.allclose(out, ref_u, rtol=1e-3, atol=1e-3), "mismatch vs reference"

    print("KERNEL_OK")
</pallas_src>

<mosaic_0001>
module attributes {stable_mosaic.version = 11 : i64} {
  func.func @_linear_kernel(%arg0: i32, %arg1: memref<256x128xf32, #tpu.memory_space<vmem>>, %arg2: memref<128x128xbf16, #tpu.memory_space<vmem>>, %arg3: memref<1x128xf32, #tpu.memory_space<vmem>>, %arg4: memref<256x128xf32, #tpu.memory_space<vmem>>) attributes {dimension_semantics = [#tpu.dimension_semantics<parallel>], iteration_bounds = array<i64: 1>, scalar_prefetch = 0 : i64, scratch_operands = 0 : i64, tpu.core_type = #tpu.core_type<tc>, window_params = [{transform_indices = @transform_0, window_bounds = array<i64: 256, 128>}, {pipeline_mode = #tpu.pipeline_mode<synchronous>, transform_indices = @transform_1, window_bounds = array<i64: 128, 128>}, {pipeline_mode = #tpu.pipeline_mode<synchronous>, transform_indices = @transform_2, window_bounds = array<i64: 1, 128>}, {transform_indices = @transform_3, window_bounds = array<i64: 256, 128>}]} {
    %c0 = arith.constant 0 : index
    %c0_0 = arith.constant 0 : index
    %0 = vector.load %arg1[%c0, %c0_0] : memref<256x128xf32, #tpu.memory_space<vmem>>, vector<256x128xf32>
    %1 = arith.truncf %0 : vector<256x128xf32> to vector<256x128xbf16>
    %c0_1 = arith.constant 0 : index
    %c0_2 = arith.constant 0 : index
    %2 = vector.load %arg2[%c0_1, %c0_2] : memref<128x128xbf16, #tpu.memory_space<vmem>>, vector<128x128xbf16>
    %cst = arith.constant dense<0.000000e+00> : vector<256x128xf32>
    %3 = tpu.matmul %1, %2, %cst {dimension_numbers = #tpu.dot_dimension_numbers<[1], [0], [0], [1], [0, 0, 1, 1], [], []>} : vector<256x128xbf16>, vector<128x128xbf16>, vector<256x128xf32> -> vector<256x128xf32>
    %c0_3 = arith.constant 0 : index
    %c0_4 = arith.constant 0 : index
    %4 = vector.load %arg3[%c0_3, %c0_4] : memref<1x128xf32, #tpu.memory_space<vmem>>, vector<1x128xf32>
    %5 = vector.broadcast %4 : vector<1x128xf32> to vector<256x128xf32>
    %6 = arith.addf %3, %5 : vector<256x128xf32>
    %c0_5 = arith.constant 0 : index
    %c0_6 = arith.constant 0 : index
    %7 = vector.load %arg4[%c0_5, %c0_6] : memref<256x128xf32, #tpu.memory_space<vmem>>, vector<256x128xf32>
    tpu.vector_store %arg4[%c0_5, %c0_6], %6 {strides = array<i32>} : memref<256x128xf32, #tpu.memory_space<vmem>>, vector<256x128xf32>,
    return
  }
  func.func @transform_0(%arg0: i32) -> (i32, i32) {
    %c0_i32 = arith.constant 0 : i32
    %c0_i32_0 = arith.constant 0 : i32
    return %arg0, %c0_i32 : i32, i32
  }
  func.func @transform_1(%arg0: i32) -> (i32, i32) {
    %c0_i32 = arith.constant 0 : i32
    %c0_i32_0 = arith.constant 0 : i32
    %c0_i32_1 = arith.constant 0 : i32
    return %c0_i32, %c0_i32_0 : i32, i32
  }
  func.func @transform_2(%arg0: i32) -> (i32, i32) {
    %c0_i32 = arith.constant 0 : i32
    %c0_i32_0 = arith.constant 0 : i32
    %c0_i32_1 = arith.constant 0 : i32
    return %c0_i32, %c0_i32_0 : i32, i32
  }
  func.func @transform_3(%arg0: i32) -> (i32, i32) {
    %c0_i32 = arith.constant 0 : i32
    %c0_i32_0 = arith.constant 0 : i32
    return %arg0, %c0_i32 : i32, i32
  }
}

</mosaic_0001>

<bundles_post_ra>
// kernel: tpu_custom_call.1
= control target key start
LH: loop header
LB: loop body
LE: loop exit
PB: predicated region body
PF: predicated region fallthrough
CT: control target
= control target key end

     0   :  { %8 = vsyncpa [#allocation3], 0  ;;  %s664_s0 = inlined_call_operand.hbm [shape: f32[256,128], index: 0, kind: input, shape index: {}]   ;;  %s665_s1 = inlined_call_operand.hbm [shape: bf16[128,128], index: 1, kind: input, shape index: {}]   ;;  %s666_s2 = inlined_call_operand.vmem [shape: f32[1,128], index: 2, kind: input, shape index: {}]   ;;  %s667_s3 = inlined_call_operand.hbm [shape: f32[256,128], index: 3, kind: output, shape index: {}]  }
   0x1   :  { %9 = vsyncpa [#allocation6], 0 }
   0x2   :  { %10 = vsyncpa [#allocation4], 0  ;;  %s558_s12 = smov [#allocation2]   ;;  %s486_s16 = scalar_lea.hbm %s664_s0, 4096 }
   0x3   :  { %s16_s13 = sshll.u32 %s558_s12, 4  ;;  %p487_p0 = scmp.ne.s32.totalorder %s664_s0, %s486_s16  ;;  %s17_s13 = int_to_ptr.vmem [resolvable:$true] %s16_s13 }
   0x4   :  { %p490_p1 = scmp.lt.u32.totalorder %s486_s16, %s664_s0 }
   0x6   :  { %p492_p2 = pnand %p490_p1, %p487_p0 }
   0x8   :  { %495 = shalt.err (!%p492_p2)
}
   0x9   :  { %s496_s21 = scalar_lea.vmem %s17_s13, 4096  ;;  %p501_p4 = scmp.lt.s32.totalorder %s17_s13, %s17_s13 }
   0xa   :  { %p497_p3 = scmp.ne.s32.totalorder %s17_s13, %s496_s21  ;;  %p502_p5 = scmp.lt.s32.totalorder %s496_s21, %s496_s21 }
   0xc   :  { %p503_p6 = por %p502_p5, %p501_p4 }
   0xe   :  { %p504_p7 = pnand %p503_p6, %p497_p3 }
  0x10   :  { %507 = shalt.err (!%p504_p7)
}
  0x11   :  { %s559_s22 = smov 128   ;;  %s560_s23 = smov 8  }
  0x12   :  { %22 = dma.hbm_to_vmem [thread:$0]  %s664_s0, 4096, %s17_s13, [#allocation3], %s559_s22, %s559_s22, %s560_s23  }
  0x13   :  { %s561_s26 = smov [#allocation5]   ;;  %s508_s30 = scalar_lea.hbm %s665_s1, 1024 }
  0x14   :  { %s28_s27 = sshll.u32 %s561_s26, 4  ;;  %p509_p8 = scmp.ne.s32.totalorder %s665_s1, %s508_s30  ;;  %s29_s27 = int_to_ptr.vmem [resolvable:$true] %s28_s27 }
  0x15   :  { %p512_p9 = scmp.lt.u32.totalorder %s508_s30, %s665_s1 }
  0x17   :  { %p514_p10 = pnand %p512_p9, %p509_p8 }
  0x19   :  { %517 = shalt.err (!%p514_p10)
}
  0x1a   :  { %s518_s8 = scalar_lea.vmem %s29_s27, 1024  ;;  %p523_p12 = scmp.lt.s32.totalorder %s29_s27, %s29_s27 }
  0x1b   :  { %p519_p11 = scmp.ne.s32.totalorder %s29_s27, %s518_s8  ;;  %p524_p13 = scmp.lt.s32.totalorder %s518_s8, %s518_s8 }
  0x1d   :  { %p525_p0 = por %p524_p13, %p523_p12 }
  0x1f   :  { %p526_p1 = pnand %p525_p0, %p519_p11 }
  0x21   :  { %529 = shalt.err (!%p526_p1)
}
  0x22   :  { %s562_s0 = smov 64   ;;  %s563_s9 = smov 4  }
  0x23   :  { %34 = dma.hbm_to_vmem [thread:$0]  %s665_s1, 1024, %s29_s27, [#allocation6], %s562_s0, %s562_s0, %s563_s9  }
  0x24   :  { %552 = dma.done.wait [#allocation3], 4096  }
  0x25   :  { %553 = vsyncadd [#allocation3], 4294963200 }
  0x26   :  { %554 = dma.done.wait [#allocation6], 1024  }
  0x27   :  { %555 = vsyncadd [#allocation6], 4294966272  ;;  %v478_v0 = vld [vmem:[#allocation5] sm:$0xff]   ;;  %v479_v1 = vld [vmem:[#allocation5 + $0x8] sm:$0xff]  }
  0x28   :  { %407 = vmatprep.subr.bf16.mxu0 %v478_v0  ;;  %455 = vmatprep.subr.bf16.mxu1 %v478_v0  ;;  %v480_v2 = vld [vmem:[#allocation5 + $0x10] sm:$0xff]   ;;  %v481_v3 = vld [vmem:[#allocation5 + $0x18] sm:$0xff]   ;;  %v44_v4 = vld [vmem:[#allocation2] sm:$0xff] }
  0x29   :  { %408 = vmatpush3.bf16.msra.mxu0 %v478_v0  ;;  %463 = vmatpush3.bf16.msra.mxu1 %v478_v0  ;;  %v45_v5 = vld [vmem:[#allocation2 + $0x8] sm:$0xff]  ;;  %v60_v6 = vld [vmem:[#allocation2 + $0x80] sm:$0xff]  ;;  %v484_v12 = vld [vmem:[#allocation5 + $0x30] sm:$0xff]  }
  0x2a   :  { %409 = vmatprep.subr.bf16.mxu0 %v479_v1  ;;  %456 = vmatprep.subr.bf16.mxu1 %v479_v1  ;;  %v76_v7 = vpack.c.bf16 %v45_v5, %v44_v4  ;;  %v61_v8 = vld [vmem:[#allocation2 + $0x88] sm:$0xff]  ;;  %v482_v10 = vld [vmem:[#allocation5 + $0x20] sm:$0xff]   ;;  %v485_v13 = vld [vmem:[#allocation5 + $0x38] sm:$0xff]  }
  0x2b   :  { %v84_v9 = vpack.c.bf16 %v61_v8, %v60_v6  ;;  %v483_v11 = vld [vmem:[#allocation5 + $0x28] sm:$0xff]   ;;  %v46_v14 = vld [vmem:[#allocation2 + $0x10] sm:$0xff]  ;;  %v47_v15 = vld [vmem:[#allocation2 + $0x18] sm:$0xff] }
  0x2c   :  { %423 = vmatprep.mubr.bf16.mxu0 %v76_v7  ;;  %v62_v16 = vld [vmem:[#allocation2 + $0x90] sm:$0xff]  ;;  %v63_v17 = vld [vmem:[#allocation2 + $0x98] sm:$0xff]  ;;  %v48_v18 = vld [vmem:[#allocation2 + $0x20] sm:$0xff]  ;;  %v77_v22 = vpack.c.bf16 %v47_v15, %v46_v14 }
  0x2d   :  { %410 = vmatpush3.bf16.msra.mxu0 %v479_v1  ;;  %464 = vmatpush3.bf16.msra.mxu1 %v479_v1  ;;  %v49_v19 = vld [vmem:[#allocation2 + $0x28] sm:$0xff]  ;;  %v64_v20 = vld [vmem:[#allocation2 + $0xa0] sm:$0xff]  ;;  %v85_v23 = vpack.c.bf16 %v63_v17, %v62_v16  ;;  %v50_v26 = vld [vmem:[#allocation2 + $0x30] sm:$0xff] }
  0x2e   :  { %411 = vmatprep.subr.bf16.mxu0 %v480_v2  ;;  %457 = vmatprep.subr.bf16.mxu1 %v480_v2  ;;  %v65_v21 = vld [vmem:[#allocation2 + $0xa8] sm:$0xff]  ;;  %v78_v24 = vpack.c.bf16 %v49_v19, %v48_v18  ;;  %v51_v27 = vld [vmem:[#allocation2 + $0x38] sm:$0xff]  ;;  %v66_v28 = vld [vmem:[#allocation2 + $0xb0] sm:$0xff] }
  0x2f   :  { %439 = vmatprep.mubr.bf16.mxu1 %v84_v9  ;;  %v86_v25 = vpack.c.bf16 %v65_v21, %v64_v20  ;;  %v67_v29 = vld [vmem:[#allocation2 + $0xb8] sm:$0xff]  ;;  %v52_v30 = vld [vmem:[#allocation2 + $0x40] sm:$0xff]  ;;  %v53_v31 = vld [vmem:[#allocation2 + $0x48] sm:$0xff]  ;;  %v79_v34 = vpack.c.bf16 %v51_v27, %v50_v26 }
  0x30   :  { %v68_v32 = vld [vmem:[#allocation2 + $0xc0] sm:$0xff]  ;;  %v69_v33 = vld [vmem:[#allocation2 + $0xc8] sm:$0xff]  ;;  %v87_v35 = vpack.c.bf16 %v67_v29, %v66_v28  ;;  %v80_v36 = vpack.c.bf16 %v53_v31, %v52_v30  ;;  %v54_v38 = vld [vmem:[#allocation2 + $0x50] sm:$0xff] }
  0x31   :  { %412 = vmatpush3.bf16.msra.mxu0 %v480_v2  ;;  %465 = vmatpush3.bf16.msra.mxu1 %v480_v2  ;;  %v88_v37 = vpack.c.bf16 %v69_v33, %v68_v32  ;;  %v55_v39 = vld [vmem:[#allocation2 + $0x58] sm:$0xff]  ;;  %v70_v40 = vld [vmem:[#allocation2 + $0xd0] sm:$0xff]  ;;  %v56_v42 = vld [vmem:[#allocation2 + $0x60] sm:$0xff] }
  0x32   :  { %413 = vmatprep.subr.bf16.mxu0 %v481_v3  ;;  %458 = vmatprep.subr.bf16.mxu1 %v481_v3  ;;  %v71_v41 = vld [vmem:[#allocation2 + $0xd8] sm:$0xff]  ;;  %v57_v43 = vld [vmem:[#allocation2 + $0x68] sm:$0xff]  ;;  %v72_v44 = vld [vmem:[#allocation2 + $0xe0] sm:$0xff]  ;;  %v81_v46 = vpack.c.bf16 %v55_v39, %v54_v38 }
  0x33   :  { %v73_v45 = vld [vmem:[#allocation2 + $0xe8] sm:$0xff]  ;;  %v89_v47 = vpack.c.bf16 %v71_v41, %v70_v40  ;;  %v82_v48 = vpack.c.bf16 %v57_v43, %v56_v42  ;;  %v58_v50 = vld [vmem:[#allocation2 + $0x70] sm:$0xff]  ;;  %v59_v51 = vld [vmem:[#allocation2 + $0x78] sm:$0xff] }
  0x34   :  { %v90_v49 = vpack.c.bf16 %v73_v45, %v72_v44  ;;  %v74_v52 = vld [vmem:[#allocation2 + $0xf0] sm:$0xff]  ;;  %v75_v53 = vld [vmem:[#allocation2 + $0xf8] sm:$0xff]  ;;  %v83_v54 = vpack.c.bf16 %v59_v51, %v58_v50  ;;  %v615_v56 = vld [vmem:[%s666_s2] ss:$0 sm:$0xff]  ;;  %s564_s2 = smov [#allocation7]  }
  0x35   :  { %414 = vmatpush3.bf16.msra.mxu0 %v481_v3  ;;  %466 = vmatpush3.bf16.msra.mxu1 %v481_v3  ;;  %v91_v55 = vpack.c.bf16 %v75_v53, %v74_v52  ;;  %s361_s13 = sshll.u32 %s564_s2, 4  ;;  %s362_s13 = int_to_ptr.vmem [resolvable:$true] %s361_s13 }
  0x36   :  { %415 = vmatprep.subr.bf16.mxu0 %v482_v10  ;;  %459 = vmatprep.subr.bf16.mxu1 %v482_v10  ;;  %s530_s14 = scalar_lea.vmem %s362_s13, 4096  ;;  %p535_p3 = scmp.lt.s32.totalorder %s362_s13, %s362_s13 }
  0x37   :  { %p531_p2 = scmp.ne.s32.totalorder %s362_s13, %s530_s14  ;;  %p536_p4 = scmp.lt.s32.totalorder %s530_s14, %s530_s14 }
  0x39   :  { %416 = vmatpush3.bf16.msra.mxu0 %v482_v10  ;;  %467 = vmatpush3.bf16.msra.mxu1 %v482_v10  ;;  %p537_p5 = por %p536_p4, %p535_p3 }
  0x3a   :  { %417 = vmatprep.subr.bf16.mxu0 %v483_v11  ;;  %460 = vmatprep.subr.bf16.mxu1 %v483_v11 }
  0x3b   :  { %p538_p6 = pnand %p537_p5, %p531_p2 }
  0x3d   :  { %418 = vmatpush3.bf16.msra.mxu0 %v483_v11  ;;  %468 = vmatpush3.bf16.msra.mxu1 %v483_v11 }
  0x3e   :  { %419 = vmatprep.subr.bf16.mxu0 %v484_v12  ;;  %461 = vmatprep.subr.bf16.mxu1 %v484_v12 }
  0x41   :  { %420 = vmatpush3.bf16.msra.mxu0 %v484_v12  ;;  %469 = vmatpush3.bf16.msra.mxu1 %v484_v12 }
  0x42   :  { %421 = vmatprep.subr.bf16.mxu0 %v485_v13  ;;  %462 = vmatprep.subr.bf16.mxu1 %v485_v13 }
  0x45   :  { %422 = vmatpush3.bf16.msra.mxu0 %v485_v13  ;;  %470 = vmatpush3.bf16.msra.mxu1 %v485_v13 }
  0x48   :  { %424 = vmatmul.mubr.bf16.vlgmr.msra.gmra.mrb[0].mxu0 %v77_v22  ;;  %440 = vmatmul.mubr.bf16.vlgmr.msra.gmra.mrb[0].mxu1 %v85_v23 }
  0x49   :  { %427 = vmatprep.mubr.bf16.mxu0 %v78_v24  ;;  %443 = vmatprep.mubr.bf16.mxu1 %v86_v25 }
  0x50   :  { %428 = vmatmul.mubr.bf16.gmra.mrb[4].mxu0 %v79_v34  ;;  %444 = vmatmul.mubr.bf16.gmra.mrb[4].mxu1 %v87_v35 }
  0x51   :  { %431 = vmatprep.mubr.bf16.mxu0 %v80_v36  ;;  %447 = vmatprep.mubr.bf16.mxu1 %v88_v37 }
  0x58   :  { %432 = vmatmul.mubr.bf16.gmra.mrb[8].mxu0 %v81_v46  ;;  %448 = vmatmul.mubr.bf16.gmra.mrb[8].mxu1 %v89_v47 }
  0x59   :  { %435 = vmatprep.mubr.bf16.mxu0 %v82_v48  ;;  %451 = vmatprep.mubr.bf16.mxu1 %v90_v49 }
  0x60   :  { %436 = vmatmul.mubr.bf16.gmra.mrb[12].mxu0 %v83_v54  ;;  %452 = vmatmul.mubr.bf16.gmra.mrb[12].mxu1 %v91_v55 }
 0x11b   :  { %v425_v57 = vpop.f32.mrb[0].mxu0  ;;  %v441_v58 = vpop.f32.mrb[0].mxu1 }
 0x11c   :  { %v206_v59 = vadd.f32 %v425_v57, %v615_v56  ;;  %v270_v60 = vadd.f32 %v441_v58, %v615_v56  ;;  %v197_v61 = vpop.f32.mrb[1].mxu0  ;;  %v261_v62 = vpop.f32.mrb[1].mxu1 }
 0x11d   :  { %v198_v63 = vadd.f32 %v615_v56, %v197_v61  ;;  %v262_v0 = vadd.f32 %v615_v56, %v261_v62  ;;  %v426_v1 = vpop.f32.mrb[2].mxu0  ;;  %v442_v2 = vpop.f32.mrb[2].mxu1 }
 0x11e   :  { %326 = vst [vmem:[#allocation7 + $0x10] sm:$0xff] %v206_v59  ;;  %342 = vst [vmem:[#allocation7 + $0x90] sm:$0xff] %v270_v60  ;;  %v209_v3 = vadd.f32 %v426_v1, %v615_v56  ;;  %v273_v4 = vadd.f32 %v442_v2, %v615_v56  ;;  %v200_v5 = vpop.f32.mrb[3].mxu0  ;;  %v264_v6 = vpop.f32.mrb[3].mxu1 }
 0x11f   :  { %324 = vst [vmem:[#allocation7] sm:$0xff] %v198_v63  ;;  %340 = vst [vmem:[#allocation7 + $0x80] sm:$0xff] %v262_v0  ;;  %v201_v7 = vadd.f32 %v615_v56, %v200_v5  ;;  %v265_v8 = vadd.f32 %v615_v56, %v264_v6 }
 0x120   :  { %327 = vst [vmem:[#allocation7 + $0x18] sm:$0xff] %v209_v3  ;;  %343 = vst [vmem:[#allocation7 + $0x98] sm:$0xff] %v273_v4 }
 0x121   :  { %325 = vst [vmem:[#allocation7 + $0x8] sm:$0xff] %v201_v7  ;;  %341 = vst [vmem:[#allocation7 + $0x88] sm:$0xff] %v265_v8 }
 0x123   :  { %v429_v9 = vpop.f32.mrb[4].mxu0  ;;  %v445_v10 = vpop.f32.mrb[4].mxu1 }
 0x124   :  { %v222_v11 = vadd.f32 %v429_v9, %v615_v56  ;;  %v286_v12 = vadd.f32 %v445_v10, %v615_v56  ;;  %v213_v13 = vpop.f32.mrb[5].mxu0  ;;  %v277_v14 = vpop.f32.mrb[5].mxu1 }
 0x125   :  { %v214_v15 = vadd.f32 %v615_v56, %v213_v13  ;;  %v278_v16 = vadd.f32 %v615_v56, %v277_v14  ;;  %v430_v17 = vpop.f32.mrb[6].mxu0  ;;  %v446_v18 = vpop.f32.mrb[6].mxu1 }
 0x126   :  { %330 = vst [vmem:[#allocation7 + $0x30] sm:$0xff] %v222_v11  ;;  %346 = vst [vmem:[#allocation7 + $0xb0] sm:$0xff] %v286_v12  ;;  %v225_v19 = vadd.f32 %v430_v17, %v615_v56  ;;  %v289_v20 = vadd.f32 %v446_v18, %v615_v56  ;;  %v216_v21 = vpop.f32.mrb[7].mxu0  ;;  %v280_v22 = vpop.f32.mrb[7].mxu1 }
 0x127   :  { %328 = vst [vmem:[#allocation7 + $0x20] sm:$0xff] %v214_v15  ;;  %344 = vst [vmem:[#allocation7 + $0xa0] sm:$0xff] %v278_v16  ;;  %v217_v23 = vadd.f32 %v615_v56, %v216_v21  ;;  %v281_v24 = vadd.f32 %v615_v56, %v280_v22 }
 0x128   :  { %331 = vst [vmem:[#allocation7 + $0x38] sm:$0xff] %v225_v19  ;;  %347 = vst [vmem:[#allocation7 + $0xb8] sm:$0xff] %v289_v20 }
 0x129   :  { %329 = vst [vmem:[#allocation7 + $0x28] sm:$0xff] %v217_v23  ;;  %345 = vst [vmem:[#allocation7 + $0xa8] sm:$0xff] %v281_v24 }
 0x12b   :  { %v433_v25 = vpop.f32.mrb[8].mxu0  ;;  %v449_v26 = vpop.f32.mrb[8].mxu1 }
 0x12c   :  { %v238_v27 = vadd.f32 %v433_v25, %v615_v56  ;;  %v302_v28 = vadd.f32 %v449_v26, %v615_v56  ;;  %v229_v29 = vpop.f32.mrb[9].mxu0  ;;  %v293_v30 = vpop.f32.mrb[9].mxu1 }
 0x12d   :  { %v230_v31 = vadd.f32 %v615_v56, %v229_v29  ;;  %v294_v32 = vadd.f32 %v615_v56, %v293_v30  ;;  %v434_v33 = vpop.f32.mrb[10].mxu0  ;;  %v450_v34 = vpop.f32.mrb[10].mxu1 }
 0x12e   :  { %334 = vst [vmem:[#allocation7 + $0x50] sm:$0xff] %v238_v27  ;;  %350 = vst [vmem:[#allocation7 + $0xd0] sm:$0xff] %v302_v28  ;;  %v241_v35 = vadd.f32 %v434_v33, %v615_v56  ;;  %v305_v36 = vadd.f32 %v450_v34, %v615_v56  ;;  %v232_v37 = vpop.f32.mrb[11].mxu0  ;;  %v296_v38 = vpop.f32.mrb[11].mxu1 }
 0x12f   :  { %332 = vst [vmem:[#allocation7 + $0x40] sm:$0xff] %v230_v31  ;;  %348 = vst [vmem:[#allocation7 + $0xc0] sm:$0xff] %v294_v32  ;;  %v233_v39 = vadd.f32 %v615_v56, %v232_v37  ;;  %v297_v40 = vadd.f32 %v615_v56, %v296_v38 }
 0x130   :  { %335 = vst [vmem:[#allocation7 + $0x58] sm:$0xff] %v241_v35  ;;  %351 = vst [vmem:[#allocation7 + $0xd8] sm:$0xff] %v305_v36 }
 0x131   :  { %333 = vst [vmem:[#allocation7 + $0x48] sm:$0xff] %v233_v39  ;;  %349 = vst [vmem:[#allocation7 + $0xc8] sm:$0xff] %v297_v40 }
 0x133   :  { %v437_v41 = vpop.f32.mrb[12].mxu0  ;;  %v453_v42 = vpop.f32.mrb[12].mxu1 }
 0x134   :  { %v254_v43 = vadd.f32 %v437_v41, %v615_v56  ;;  %v318_v44 = vadd.f32 %v453_v42, %v615_v56  ;;  %v245_v45 = vpop.f32.mrb[13].mxu0  ;;  %v309_v46 = vpop.f32.mrb[13].mxu1 }
 0x135   :  { %v246_v47 = vadd.f32 %v615_v56, %v245_v45  ;;  %v310_v48 = vadd.f32 %v615_v56, %v309_v46  ;;  %v438_v49 = vpop.f32.mrb[14].mxu0  ;;  %v454_v50 = vpop.f32.mrb[14].mxu1 }
 0x136   :  { %338 = vst [vmem:[#allocation7 + $0x70] sm:$0xff] %v254_v43  ;;  %354 = vst [vmem:[#allocation7 + $0xf0] sm:$0xff] %v318_v44  ;;  %v257_v51 = vadd.f32 %v438_v49, %v615_v56  ;;  %v321_v52 = vadd.f32 %v454_v50, %v615_v56  ;;  %v248_v53 = vpop.f32.mrb[15].mxu0  ;;  %v312_v54 = vpop.f32.mrb[15].mxu1 }
 0x137   :  { %336 = vst [vmem:[#allocation7 + $0x60] sm:$0xff] %v246_v47  ;;  %352 = vst [vmem:[#allocation7 + $0xe0] sm:$0xff] %v310_v48  ;;  %v249_v55 = vadd.f32 %v615_v56, %v248_v53  ;;  %v313_v57 = vadd.f32 %v615_v56, %v312_v54 }
 0x138   :  { %339 = vst [vmem:[#allocation7 + $0x78] sm:$0xff] %v257_v51  ;;  %355 = vst [vmem:[#allocation7 + $0xf8] sm:$0xff] %v321_v52 }
 0x139   :  { %337 = vst [vmem:[#allocation7 + $0x68] sm:$0xff] %v249_v55  ;;  %353 = vst [vmem:[#allocation7 + $0xe8] sm:$0xff] %v313_v57 }
 0x13a   :  { %541 = shalt.err (!%p538_p6)
}
 0x13b   :  { %s542_s17 = scalar_lea.hbm %s667_s3, 4096 }
 0x13c   :  { %p543_p7 = scmp.ne.s32.totalorder %s667_s3, %s542_s17  ;;  %p546_p8 = scmp.lt.u32.totalorder %s542_s17, %s667_s3 }
 0x13e   :  { %p548_p9 = pnand %p546_p8, %p543_p7 }
 0x140   :  { %551 = shalt.err (!%p548_p9)
}
 0x141   :  { %367 = dma.vmem_to_hbm [thread:$0]  %s362_s13, 4096, %s667_s3, [#allocation4], %s559_s22, %s559_s22, %s560_s23  }
 0x142   :  { %556 = dma.done.wait [#allocation4], 4096  }
 0x143   :  { %557 = vsyncadd [#allocation4], 4294963200 }
 0x144   :  { %371 = vsyncpa [#allocation3], 1 }
 0x145   :  { %372 = vsyncpa [#allocation6], 1 }
 0x146   :  { %373 = vsyncpa [#allocation4], 1 }

</bundles_post_ra>
